<compile_context>
chip_gen: v7x
topology: tpu7x:2x2x1
jax: 0.10.0
libtpu: 0.0.40
codegen_flags: <defaults>
</compile_context>

<pallas_src>
import functools

import jax
import jax.numpy as jnp
from jax.experimental import pallas as pl
from jax.experimental.pallas import tpu as pltpu


def _round_up(x, m):
    return (x + m - 1) // m * m


# ----------------------------------------------------------------------------
# Pallas kernel: whole MLP forward for one lane-dense batch tile (transposed).
#   x_ref    : (input_dim, tile_b)
#   w_in_ref : (neurons, input_dim)     b_in_ref : (neurons, 1)
#   w_h_ref  : (n_h, neurons, neurons)  b_h_ref  : (n_h, neurons, 1)   [optional]
#   w_out_ref: (out_dim, neurons)       b_out_ref: (out_dim, 1)
#   o_ref    : (out_dim, tile_b)
# ----------------------------------------------------------------------------
def mlp_kernel(*refs, n_hidden_minus_1):
    if n_hidden_minus_1 > 0:
        (x_ref, w_in_ref, b_in_ref, w_h_ref, b_h_ref,
         w_out_ref, b_out_ref, o_ref) = refs
    else:
        (x_ref, w_in_ref, b_in_ref, w_out_ref, b_out_ref, o_ref) = refs
        w_h_ref = b_h_ref = None

    # Input layer + tanh: (neurons, in) @ (in, tile_b) -> (neurons, tile_b)
    h = jnp.tanh(
        jnp.dot(w_in_ref[...], x_ref[...], preferred_element_type=jnp.float32)
        + b_in_ref[...]
    )

    # Hidden square layers + tanh (statically unrolled so the LLO scheduler
    # can interleave layer k's matmul with layer k-1's EUP tanh drain).
    for k in range(n_hidden_minus_1):
        h = jnp.tanh(
            jnp.dot(w_h_ref[k], h, preferred_element_type=jnp.float32)
            + b_h_ref[k]
        )

    # Output layer, no activation: (out, neurons) @ (neurons, tile_b)
    o_ref[...] = (
        jnp.dot(w_out_ref[...], h, preferred_element_type=jnp.float32)
        + b_out_ref[...]
    ).astype(o_ref.dtype)


# ----------------------------------------------------------------------------
# Wrapper: transposes to batch-on-lanes layout, pads the batch to a multiple
# of the lane-dense tile, tiles the (parallel) batch axis, un-pads / transposes
# the result back.
# ----------------------------------------------------------------------------
def mlp_forward(x, params, *, tile_b=None):
    w_in, b_in, w_h, b_h, w_out, b_out = params
    batch, in_dim = x.shape
    neurons = w_in.shape[0]
    out_dim = w_out.shape[0]
    n_h = 0 if w_h is None else w_h.shape[0]

    # Lane-dense tile on the batch axis.  Default: one big tile (grid=(1,))
    # for small/medium batches, capped at 4096 rows per step for very large
    # batches.  On v7x pass tile_b explicitly so the grid has an even number
    # of steps (2 TensorCores shard the "parallel" axis).
    if tile_b is None:
        tile_b = min(4096, _round_up(batch, 128))
    tile_b = max(128, _round_up(tile_b, 128))
    padded_batch = _round_up(batch, tile_b)
    grid = (padded_batch // tile_b,)

    # Transpose to (input_dim, batch) and zero-pad the batch tail (padded
    # columns produce finite garbage that is sliced off below).
    x_t = x.T
    if padded_batch != batch:
        x_t = jnp.pad(x_t, ((0, 0), (0, padded_batch - batch)))

    kernel = functools.partial(mlp_kernel, n_hidden_minus_1=n_h)

    in_specs = [
        pl.BlockSpec((in_dim, tile_b), lambda i: (0, i)),   # x^T batch tile
        pl.BlockSpec(w_in.shape, lambda i: (0, 0)),         # W_in (resident)
        pl.BlockSpec(b_in.shape, lambda i: (0, 0)),         # b_in
    ]
    operands = [x_t, w_in, b_in]
    if n_h > 0:
        in_specs += [
            pl.BlockSpec(w_h.shape, lambda i: (0, 0, 0)),   # hidden W stack
            pl.BlockSpec(b_h.shape, lambda i: (0, 0, 0)),   # hidden b stack
        ]
        operands += [w_h, b_h]
    in_specs += [
        pl.BlockSpec(w_out.shape, lambda i: (0, 0)),        # W_out
        pl.BlockSpec(b_out.shape, lambda i: (0, 0)),        # b_out
    ]
    operands += [w_out, b_out]

    # Advisory cost estimate so XLA schedules the custom call sensibly when
    # this forward sits inside a PINN training step.
    flops = 2 * padded_batch * (
        in_dim * neurons + n_h * neurons * neurons + neurons * out_dim)
    transcendentals = padded_batch * neurons * (n_h + 1)
    param_bytes = int(sum(int(p.size) * p.dtype.itemsize for p in operands[1:]))
    bytes_accessed = (int(x_t.size) * 4 + param_bytes + padded_batch * out_dim * 4)

    out_t = pl.pallas_call(
        kernel,
        out_shape=jax.ShapeDtypeStruct((out_dim, padded_batch), jnp.float32),
        grid_spec=pltpu.PrefetchScalarGridSpec(
            num_scalar_prefetch=0,
            grid=grid,
            in_specs=in_specs,
            out_specs=pl.BlockSpec((out_dim, tile_b), lambda i: (0, i)),
        ),
        compiler_params=pltpu.CompilerParams(
            dimension_semantics=("parallel",),
        ),
        cost_estimate=pl.CostEstimate(
            flops=int(flops),
            transcendentals=int(transcendentals),
            bytes_accessed=int(bytes_accessed),
        ),
    )(*operands)

    # Un-pad and return in the original (batch, out_dim) layout.
    return out_t[:, :batch].T


# ----------------------------------------------------------------------------
# Deterministic Xavier-uniform init (gain for tanh = 5/3), zero biases —
# mirrors NeuralNet.init_xavier (different RNG stream, same distribution).
# Weights are stored PyTorch-style: (out_features, in_features).
# ----------------------------------------------------------------------------
def xavier_uniform(key, fan_out, fan_in, gain):
    bound = gain * (6.0 / (fan_in + fan_out)) ** 0.5
    return jax.random.uniform(key, (fan_out, fan_in), jnp.float32, -bound, bound)


def init_params(key, input_dim, output_dim, n_hidden_layers, neurons):
    gain = 5.0 / 3.0  # nn.init.calculate_gain('tanh')
    n_h = n_hidden_layers - 1
    keys = jax.random.split(key, n_h + 2)
    w_in = xavier_uniform(keys[0], neurons, input_dim, gain)
    b_in = jnp.zeros((neurons, 1), jnp.float32)
    if n_h > 0:
        w_h = jnp.stack([xavier_uniform(keys[1 + k], neurons, neurons, gain)
                         for k in range(n_h)])
        b_h = jnp.zeros((n_h, neurons, 1), jnp.float32)
    else:
        w_h = None
        b_h = None
    w_out = xavier_uniform(keys[-1], output_dim, neurons, gain)
    b_out = jnp.zeros((output_dim, 1), jnp.float32)
    return (w_in, b_in, w_h, b_h, w_out, b_out)


# Pure-JAX reference (standard batch-major layout) for the correctness check.
def mlp_reference(x, params):
    w_in, b_in, w_h, b_h, w_out, b_out = params
    h = jnp.tanh(x @ w_in.T + b_in[:, 0])
    if w_h is not None:
        for k in range(w_h.shape[0]):
            h = jnp.tanh(h @ w_h[k].T + b_h[k][:, 0])
    return h @ w_out.T + b_out[:, 0]


if __name__ == "__main__":
    # Small shapes consistent with the module (typical PINN-style MLP):
    #   input_dimension=2, output_dimension=1, n_hidden_layers=4, neurons=32
    input_dim, output_dim = 2, 1
    n_hidden_layers, neurons = 4, 32
    batch = 64  # padded to one 128-wide lane tile -> grid=(1,)

    key = jax.random.PRNGKey(0)
    k_x, k_p = jax.random.split(key)
    x = jax.random.normal(k_x, (batch, input_dim), jnp.float32)
    params = init_params(k_p, input_dim, output_dim, n_hidden_layers, neurons)

    y = jax.block_until_ready(mlp_forward(x, params))
    y_ref = mlp_reference(x, params)
    assert y.shape == (batch, output_dim)
    assert jnp.max(jnp.abs(y - y_ref)) < 1e-5

    # Also exercise the n_hidden_layers == 1 path (no square hidden layers).
    params1 = init_params(k_p, input_dim, output_dim, 1, neurons)
    y1 = jax.block_until_ready(mlp_forward(x, params1))
    assert y1.shape == (batch, output_dim)
    assert jnp.max(jnp.abs(y1 - mlp_reference(x, params1))) < 1e-5

    print("KERNEL_OK")
</pallas_src>

<mosaic_0001>
module attributes {stable_mosaic.version = 11 : i64} {
  func.func @mlp_kernel(%arg0: i32, %arg1: memref<2x128xf32, #tpu.memory_space<vmem>>, %arg2: memref<32x2xf32, #tpu.memory_space<vmem>>, %arg3: memref<32x1xf32, #tpu.memory_space<vmem>>, %arg4: memref<3x32x32xf32, #tpu.memory_space<vmem>>, %arg5: memref<3x32x1xf32, #tpu.memory_space<vmem>>, %arg6: memref<1x32xf32, #tpu.memory_space<vmem>>, %arg7: memref<1x1xf32, #tpu.memory_space<vmem>>, %arg8: memref<1x128xf32, #tpu.memory_space<vmem>>) attributes {dimension_semantics = [#tpu.dimension_semantics<parallel>], iteration_bounds = array<i64: 1>, scalar_prefetch = 0 : i64, scratch_operands = 0 : i64, tpu.core_type = #tpu.core_type<tc>, window_params = [{transform_indices = @transform_0, window_bounds = array<i64: 2, 128>}, {pipeline_mode = #tpu.pipeline_mode<synchronous>, transform_indices = @transform_1, window_bounds = array<i64: 32, 2>}, {pipeline_mode = #tpu.pipeline_mode<synchronous>, transform_indices = @transform_2, window_bounds = array<i64: 32, 1>}, {pipeline_mode = #tpu.pipeline_mode<synchronous>, transform_indices = @transform_3, window_bounds = array<i64: 3, 32, 32>}, {pipeline_mode = #tpu.pipeline_mode<synchronous>, transform_indices = @transform_4, window_bounds = array<i64: 3, 32, 1>}, {pipeline_mode = #tpu.pipeline_mode<synchronous>, transform_indices = @transform_5, window_bounds = array<i64: 1, 32>}, {pipeline_mode = #tpu.pipeline_mode<synchronous>, transform_indices = @transform_6, window_bounds = array<i64: 1, 1>}, {transform_indices = @transform_7, window_bounds = array<i64: 1, 128>}]} {
    %c0 = arith.constant 0 : index
    %c0_0 = arith.constant 0 : index
    %0 = vector.load %arg2[%c0, %c0_0] : memref<32x2xf32, #tpu.memory_space<vmem>>, vector<32x2xf32>
    %c0_1 = arith.constant 0 : index
    %c0_2 = arith.constant 0 : index
    %1 = vector.load %arg1[%c0_1, %c0_2] : memref<2x128xf32, #tpu.memory_space<vmem>>, vector<2x128xf32>
    %cst = arith.constant dense<0.000000e+00> : vector<32x128xf32>
    %2 = tpu.matmul %0, %1, %cst {dimension_numbers = #tpu.dot_dimension_numbers<[1], [0], [0], [1], [0, 0, 1, 1], [], []>} : vector<32x2xf32>, vector<2x128xf32>, vector<32x128xf32> -> vector<32x128xf32>
    %c0_3 = arith.constant 0 : index
    %c0_4 = arith.constant 0 : index
    %3 = vector.load %arg3[%c0_3, %c0_4] : memref<32x1xf32, #tpu.memory_space<vmem>>, vector<32x1xf32>
    %4 = vector.broadcast %3 : vector<32x1xf32> to vector<32x128xf32>
    %5 = arith.addf %2, %4 : vector<32x128xf32>
    %6 = math.tanh %5 : vector<32x128xf32>
    %c0_5 = arith.constant 0 : index
    %c0_6 = arith.constant 0 : index
    %c0_7 = arith.constant 0 : index
    %7 = vector.load %arg4[%c0_5, %c0_6, %c0_7] : memref<3x32x32xf32, #tpu.memory_space<vmem>>, vector<1x32x32xf32>
    %8 = vector.shape_cast %7 : vector<1x32x32xf32> to vector<32x32xf32>
    %cst_8 = arith.constant dense<0.000000e+00> : vector<32x128xf32>
    %9 = tpu.matmul %8, %6, %cst_8 {dimension_numbers = #tpu.dot_dimension_numbers<[1], [0], [0], [1], [0, 0, 1, 1], [], []>} : vector<32x32xf32>, vector<32x128xf32>, vector<32x128xf32> -> vector<32x128xf32>
    %c0_9 = arith.constant 0 : index
    %c0_10 = arith.constant 0 : index
    %c0_11 = arith.constant 0 : index
    %10 = vector.load %arg5[%c0_9, %c0_10, %c0_11] : memref<3x32x1xf32, #tpu.memory_space<vmem>>, vector<1x32x1xf32>
    %11 = vector.shape_cast %10 : vector<1x32x1xf32> to vector<32x1xf32>
    %12 = vector.broadcast %11 : vector<32x1xf32> to vector<32x128xf32>
    %13 = arith.addf %9, %12 : vector<32x128xf32>
    %14 = math.tanh %13 : vector<32x128xf32>
    %c1 = arith.constant 1 : index
    %c0_12 = arith.constant 0 : index
    %c0_13 = arith.constant 0 : index
    %15 = vector.load %arg4[%c1, %c0_12, %c0_13] : memref<3x32x32xf32, #tpu.memory_space<vmem>>, vector<1x32x32xf32>
    %16 = vector.shape_cast %15 : vector<1x32x32xf32> to vector<32x32xf32>
    %cst_14 = arith.constant dense<0.000000e+00> : vector<32x128xf32>
    %17 = tpu.matmul %16, %14, %cst_14 {dimension_numbers = #tpu.dot_dimension_numbers<[1], [0], [0], [1], [0, 0, 1, 1], [], []>} : vector<32x32xf32>, vector<32x128xf32>, vector<32x128xf32> -> vector<32x128xf32>
    %c1_15 = arith.constant 1 : index
    %c0_16 = arith.constant 0 : index
    %c0_17 = arith.constant 0 : index
    %18 = vector.load %arg5[%c1_15, %c0_16, %c0_17] : memref<3x32x1xf32, #tpu.memory_space<vmem>>, vector<1x32x1xf32>
    %19 = vector.shape_cast %18 : vector<1x32x1xf32> to vector<32x1xf32>
    %20 = vector.broadcast %19 : vector<32x1xf32> to vector<32x128xf32>
    %21 = arith.addf %17, %20 : vector<32x128xf32>
    %22 = math.tanh %21 : vector<32x128xf32>
    %c2 = arith.constant 2 : index
    %c0_18 = arith.constant 0 : index
    %c0_19 = arith.constant 0 : index
    %23 = vector.load %arg4[%c2, %c0_18, %c0_19] : memref<3x32x32xf32, #tpu.memory_space<vmem>>, vector<1x32x32xf32>
    %24 = vector.shape_cast %23 : vector<1x32x32xf32> to vector<32x32xf32>
    %cst_20 = arith.constant dense<0.000000e+00> : vector<32x128xf32>
    %25 = tpu.matmul %24, %22, %cst_20 {dimension_numbers = #tpu.dot_dimension_numbers<[1], [0], [0], [1], [0, 0, 1, 1], [], []>} : vector<32x32xf32>, vector<32x128xf32>, vector<32x128xf32> -> vector<32x128xf32>
    %c2_21 = arith.constant 2 : index
    %c0_22 = arith.constant 0 : index
    %c0_23 = arith.constant 0 : index
    %26 = vector.load %arg5[%c2_21, %c0_22, %c0_23] : memref<3x32x1xf32, #tpu.memory_space<vmem>>, vector<1x32x1xf32>
    %27 = vector.shape_cast %26 : vector<1x32x1xf32> to vector<32x1xf32>
    %28 = vector.broadcast %27 : vector<32x1xf32> to vector<32x128xf32>
    %29 = arith.addf %25, %28 : vector<32x128xf32>
    %30 = math.tanh %29 : vector<32x128xf32>
    %c0_24 = arith.constant 0 : index
    %c0_25 = arith.constant 0 : index
    %31 = vector.load %arg6[%c0_24, %c0_25] : memref<1x32xf32, #tpu.memory_space<vmem>>, vector<1x32xf32>
    %cst_26 = arith.constant dense<0.000000e+00> : vector<1x128xf32>
    %32 = tpu.matmul %31, %30, %cst_26 {dimension_numbers = #tpu.dot_dimension_numbers<[1], [0], [0], [1], [0, 0, 1, 1], [], []>} : vector<1x32xf32>, vector<32x128xf32>, vector<1x128xf32> -> vector<1x128xf32>
    %c0_27 = arith.constant 0 : index
    %c0_28 = arith.constant 0 : index
    %33 = vector.load %arg7[%c0_27, %c0_28] : memref<1x1xf32, #tpu.memory_space<vmem>>, vector<1x1xf32>
    %34 = vector.broadcast %33 : vector<1x1xf32> to vector<1x128xf32>
    %35 = arith.addf %32, %34 : vector<1x128xf32>
    %c0_29 = arith.constant 0 : index
    %c0_30 = arith.constant 0 : index
    %36 = vector.load %arg8[%c0_29, %c0_30] : memref<1x128xf32, #tpu.memory_space<vmem>>, vector<1x128xf32>
    tpu.vector_store %arg8[%c0_29, %c0_30], %35 {strides = array<i32>} : memref<1x128xf32, #tpu.memory_space<vmem>>, vector<1x128xf32>,
    return
  }
  func.func @transform_0(%arg0: i32) -> (i32, i32) {
    %c0_i32 = arith.constant 0 : i32
    %c0_i32_0 = arith.constant 0 : i32
    return %c0_i32, %arg0 : i32, i32
  }
  func.func @transform_1(%arg0: i32) -> (i32, i32) {
    %c0_i32 = arith.constant 0 : i32
    %c0_i32_0 = arith.constant 0 : i32
    %c0_i32_1 = arith.constant 0 : i32
    return %c0_i32, %c0_i32_0 : i32, i32
  }
  func.func @transform_2(%arg0: i32) -> (i32, i32) {
    %c0_i32 = arith.constant 0 : i32
    %c0_i32_0 = arith.constant 0 : i32
    %c0_i32_1 = arith.constant 0 : i32
    return %c0_i32, %c0_i32_0 : i32, i32
  }
  func.func @transform_3(%arg0: i32) -> (i32, i32, i32) {
    %c0_i32 = arith.constant 0 : i32
    %c0_i32_0 = arith.constant 0 : i32
    %c0_i32_1 = arith.constant 0 : i32
    %c0_i32_2 = arith.constant 0 : i32
    return %c0_i32, %c0_i32_0, %c0_i32_1 : i32, i32, i32
  }
  func.func @transform_4(%arg0: i32) -> (i32, i32, i32) {
    %c0_i32 = arith.constant 0 : i32
    %c0_i32_0 = arith.constant 0 : i32
    %c0_i32_1 = arith.constant 0 : i32
    %c0_i32_2 = arith.constant 0 : i32
    return %c0_i32, %c0_i32_0, %c0_i32_1 : i32, i32, i32
  }
  func.func @transform_5(%arg0: i32) -> (i32, i32) {
    %c0_i32 = arith.constant 0 : i32
    %c0_i32_0 = arith.constant 0 : i32
    %c0_i32_1 = arith.constant 0 : i32
    return %c0_i32, %c0_i32_0 : i32, i32
  }
  func.func @transform_6(%arg0: i32) -> (i32, i32) {
    %c0_i32 = arith.constant 0 : i32
    %c0_i32_0 = arith.constant 0 : i32
    %c0_i32_1 = arith.constant 0 : i32
    return %c0_i32, %c0_i32_0 : i32, i32
  }
  func.func @transform_7(%arg0: i32) -> (i32, i32) {
    %c0_i32 = arith.constant 0 : i32
    %c0_i32_0 = arith.constant 0 : i32
    return %c0_i32, %arg0 : i32, i32
  }
}

</mosaic_0001>

<bundles_post_ra>
// kernel: tpu_custom_call.1
= control target key start
LH: loop header
LB: loop body
LE: loop exit
PB: predicated region body
PF: predicated region fallthrough
CT: control target
= control target key end

     0   :  { %s1056_s0 = inlined_call_operand.vmem [shape: f32[2,128], index: 0, kind: input, shape index: {}]   ;;  %s1057_s1 = inlined_call_operand.vmem [shape: f32[32,2], index: 1, kind: input, shape index: {}]   ;;  %s1058_s2 = inlined_call_operand.vmem [shape: f32[32,1], index: 2, kind: input, shape index: {}]   ;;  %s1059_s3 = inlined_call_operand.vmem [shape: f32[3,32,32], index: 3, kind: input, shape index: {}]   ;;  %s1060_s4 = inlined_call_operand.vmem [shape: f32[3,32,1], index: 4, kind: input, shape index: {}]   ;;  %s1061_s5 = inlined_call_operand.vmem [shape: f32[1,32], index: 5, kind: input, shape index: {}]   ;;  %s1062_s6 = inlined_call_operand.<no memory space> [shape: f32[1,1], index: 6, kind: input, shape index: {}]   ;;  %s1063_s7 = inlined_call_operand.hbm [shape: f32[1,128], index: 7, kind: output, shape index: {}]  }
   0x1   :  { %v12_v0 = vstv %s1062_s6 }
   0x2   :  { %13 = vst [vmem:[#allocation2] sm:$0x1] %v12_v0 }
   0x3   :  { %v33_v1 = vld [vmem:[%s1056_s0] sm:$0x3]  ;;  %vm71_vm0 = vcmask 1041408   ;;  %vm58_vm1 = vcmask 15360   ;;  %v30_v3 = vld [vmem:[%s1057_s1 + $0x8] sm:$0xff]  ;;  %v31_v4 = vld [vmem:[%s1057_s1 + $0x10] sm:$0xff] }
   0x4   :  { %v29_v2 = vld [vmem:[%s1057_s1] sm:$0xff]  ;;  %723 = vmatprep.subr.msk.mxu0 %vm71_vm0, %v33_v1  ;;  %v877_v6 = vmov 0   ;;  %v36_v7 = vld [vmem:[%s1058_s2 + $0x10] sm:$0xff]  ;;  %v32_v8 = vld [vmem:[%s1057_s1 + $0x18] sm:$0xff] }
   0x5   :  { %725 = vmatprep.mubr.msk.f32.mxu0 %vm58_vm1, %v29_v2  ;;  %v34_v5 = vld [vmem:[%s1058_s2] sm:$0xff]  ;;  %724 = vmatpush3.msk.msra.mxu0 %vm71_vm0, %v33_v1  ;;  %v35_v9 = vld [vmem:[%s1058_s2 + $0x8] sm:$0xff]  ;;  %v37_v10 = vld [vmem:[%s1058_s2 + $0x18] sm:$0xff] }
   0x6   :  { %819 = vset.pattern.permute.xlu0 %v877_v6  ;;  %726 = vmatmul.mubr.msk.f32.vlgmr.msra.gmra.mrb[0].mxu0 %vm58_vm1, %v30_v3 }
   0x7   :  { %40 = vperm.xlu0 %819, %v34_v5   ;;  %728 = vmatprep.mubr.msk.f32.mxu0 %vm58_vm1, %v31_v4 }
   0x8   :  { %820 = vset.pattern.permute.xlu1 %v877_v6 }
   0x9   :  { %50 = vperm.xlu1 %820, %v36_v7  }
   0xa   :  { %729 = vmatmul.mubr.msk.f32.gmra.mrb[2].mxu0 %vm58_vm1, %v32_v8 }
   0xb   :  { %45 = vperm.xlu0 %819, %v35_v9  }
   0xc   :  { %14 = vsyncpa [#allocation4], 0  ;;  %v168_v11 = vld [vmem:[%s1060_s4] sm:$0xff]  ;;  %v169_v12 = vld [vmem:[%s1060_s4 + $0x8] sm:$0xff]  ;;  %vm192_vm2 = vcmask 261120   ;;  %vm879_vm3 = vmmov 0  }
   0xd   :  { %55 = vperm.xlu1 %820, %v37_v10   ;;  %v170_v13 = vld [vmem:[%s1060_s4 + $0x10] sm:$0xff]  ;;  %v171_v14 = vld [vmem:[%s1060_s4 + $0x18] sm:$0xff]  ;;  %v668_v15 = vld [vmem:[%s1060_s4 + $0x20] sm:$0xff]  ;;  %s881_s13 = smov [#allocation3]  }
   0xe   :  { %v669_v16 = vld [vmem:[%s1060_s4 + $0x28] sm:$0xff]  ;;  %v670_v17 = vld [vmem:[%s1060_s4 + $0x30] sm:$0xff]  ;;  %v671_v18 = vld [vmem:[%s1060_s4 + $0x38] sm:$0xff]  ;;  %s647_s14 = sshll.u32 %s881_s13, 4  ;;  %s648_s14 = int_to_ptr.vmem [resolvable:$true] %s647_s14 }
   0xf   :  { %174 = vperm.xlu0 %819, %v168_v11   ;;  %v680_v19 = vld [vmem:[%s1060_s4 + $0x40] sm:$0xff]  ;;  %v681_v20 = vld [vmem:[%s1060_s4 + $0x48] sm:$0xff]  ;;  %v682_v21 = vld [vmem:[%s1060_s4 + $0x50] sm:$0xff]  ;;  %s853_s15 = scalar_lea.vmem %s648_s14, 16  ;;  %s857_s16 = scalar_lea.vmem %s648_s14, 32 }
  0x10   :  { %v683_v22 = vld [vmem:[%s1060_s4 + $0x58] sm:$0xff]  ;;  %v557_v23 = vld [vmem:[#allocation2] sm:$0x1]  ;;  %v165_v43 = vld [vmem:[%s1059_s3 + $0x8] sm:$0xff]  ;;  %p854_p0 = scmp.ne.s32.totalorder %s648_s14, %s853_s15  ;;  %p858_p1 = scmp.lt.s32.totalorder %s648_s14, %s648_s14 }
  0x11   :  { %179 = vperm.xlu1 %820, %v169_v12   ;;  %v164_v24 = vld [vmem:[%s1059_s3] sm:$0xff]  ;;  %v166_v44 = vld [vmem:[%s1059_s3 + $0x10] sm:$0xff]  ;;  %v167_v45 = vld [vmem:[%s1059_s3 + $0x18] sm:$0xff]  ;;  %p859_p2 = scmp.lt.s32.totalorder %s857_s16, %s853_s15 }
  0x12   :  { %739 = vmatprep.mubr.msk.f32.mxu1 %vm192_vm2, %v164_v24  ;;  %v664_v46 = vld [vmem:[%s1059_s3 + $0x20] sm:$0xff]  ;;  %v665_v1 = vld [vmem:[%s1059_s3 + $0x28] sm:$0xff]  ;;  %v666_v2 = vld [vmem:[%s1059_s3 + $0x30] sm:$0xff] }
  0x13   :  { %184 = vperm.xlu0 %819, %v170_v13   ;;  %753 = vmatprep.mubr.msk.f32.mxu0 %vm192_vm2, %v664_v46  ;;  %v667_v3 = vld [vmem:[%s1059_s3 + $0x38] sm:$0xff]  ;;  %v676_v4 = vld [vmem:[%s1059_s3 + $0x40] sm:$0xff]  ;;  %v678_v24 = vld [vmem:[%s1059_s3 + $0x50] sm:$0xff]  ;;  %p860_p3 = por %p859_p2, %p858_p1 }
  0x14   :  { %v556_v46 = vld [vmem:[%s1061_s5] sm:$0x1] }
  0x15   :  { %189 = vperm.xlu1 %820, %v171_v14   ;;  %p861_p4 = pnand %p860_p3, %p854_p0 }
  0x17   :  { %306 = vperm.xlu0 %819, %v668_v15  }
  0x19   :  { %311 = vperm.xlu1 %820, %v669_v16  }
  0x1b   :  { %316 = vperm.xlu0 %819, %v670_v17  }
  0x1d   :  { %321 = vperm.xlu1 %820, %v671_v18  }
  0x1f   :  { %437 = vperm.xlu0 %819, %v680_v19  }
  0x21   :  { %442 = vperm.xlu1 %820, %v681_v20  }
  0x23   :  { %447 = vperm.xlu0 %819, %v682_v21  }
  0x25   :  { %452 = vperm.xlu1 %820, %v683_v22  }
  0x27   :  { %560 = vperm.xlu0 %819, %v557_v23   ;;  %v677_v23 = vld [vmem:[%s1059_s3 + $0x48] sm:$0xff] }
  0x86   :  { %v41_v25 = vpop.permute.xlu0 %40 }
  0x88   :  { %v51_v26 = vpop.permute.xlu1 %50 }
  0x8a   :  { %v46_v27 = vpop.permute.xlu0 %45 }
  0x8c   :  { %v56_v32 = vpop.permute.xlu1 %55 }
  0x8e   :  { %v175_v48 = vpop.permute.xlu0 %174 }
  0x90   :  { %v180_v47 = vpop.permute.xlu1 %179 }
  0x92   :  { %v185_v55 = vpop.permute.xlu0 %184 }
  0x94   :  { %v190_v53 = vpop.permute.xlu1 %189 }
  0x96   :  { %v307_v6 = vpop.permute.xlu0 %306 }
  0x98   :  { %v312_v5 = vpop.permute.xlu1 %311 }
  0x9a   :  { %v317_v13 = vpop.permute.xlu0 %316 }
  0x9c   :  { %v322_v11 = vpop.permute.xlu1 %321 }
  0xd9   :  { %v727_v28 = vpop.f32.mrb[0].mxu0 }
  0xda   :  { %v147_v29 = vadd.f32 %v727_v28, %v46_v27  ;;  %v141_v30 = vpop.f32.mrb[1].mxu0  ;;  %v880_v27 = vmov 0.0   ;;  %v443_v28 = vpop.permute.xlu1 %442 }
  0xdb   :  { %v142_v31 = vadd.f32 %v141_v30, %v41_v25  ;;  %v679_v25 = vld [vmem:[%s1059_s3 + $0x58] sm:$0xff] }
  0xdc   :  { %821 = vtanh.f32 %v147_v29  ;;  %v438_v29 = vpop.permute.xlu0 %437 }
  0xdd   :  { %823 = vtanh.f32 %v142_v31  ;;  %v730_v33 = vpop.f32.mrb[2].mxu0 }
  0xde   :  { %v157_v34 = vadd.f32 %v730_v33, %v56_v32  ;;  %v151_v35 = vpop.f32.mrb[3].mxu0 }
  0xdf   :  { %v152_v36 = vadd.f32 %v151_v35, %v51_v26  ;;  %v878_v26 = vmov 0.0|0.0  }
  0xe0   :  { %825 = vtanh.f32 %v157_v34  ;;  %v453_v34 = vpop.permute.xlu1 %452 }
  0xe1   :  { %827 = vtanh.f32 %v152_v36  ;;  %v448_v36 = vpop.permute.xlu0 %447 }
  0xe6   :  { %v822_v37 = vpop.eup %821 }
  0xe7   :  { %v824_v38 = vpop.eup %823 }
  0xe8   :  { %v784_v39 = vpack.c.bf16 %v822_v37, %v824_v38 }
  0xea   :  { %v826_v40 = vpop.eup %825  ;;  %785 = vmatprep.subr.bf16.mxu1 %v784_v39 }
  0xeb   :  { %v828_v41 = vpop.eup %827  ;;  %787 = vmatpush3.bf16.msra.mxu1 %v784_v39 }
  0xec   :  { %v788_v42 = vpack.c.bf16 %v826_v40, %v828_v41 }
  0xee   :  { %789 = vmatprep.subr.bf16.mxu1 %v788_v42 }
  0xef   :  { %791 = vmatpush3.bf16.msra.mxu1 %v788_v42 }
  0xf2   :  { %740 = vmatmul.mubr.msk.f32.vlgmr.msra.gmra.mrb[0].mxu1 %vm192_vm2, %v165_v43 }
  0xf3   :  { %742 = vmatprep.mubr.msk.f32.mxu1 %vm192_vm2, %v166_v44 }
  0xf6   :  { %743 = vmatmul.mubr.msk.f32.gmra.mrb[2].mxu1 %vm192_vm2, %v167_v45 }
  0xf7   :  { %767 = vmatprep.mubr.msk.f32.mxu1 %vm192_vm2, %v676_v4 }
 0x1c5   :  { %v741_v49 = vpop.f32.mrb[0].mxu1 }
 0x1c6   :  { %v277_v50 = vadd.f32 %v741_v49, %v180_v47  ;;  %v271_v51 = vpop.f32.mrb[1].mxu1  ;;  %v563_v47 = vlaneseq }
 0x1c7   :  { %v272_v52 = vadd.f32 %v271_v51, %v175_v48 }
 0x1c8   :  { %829 = vtanh.f32 %v277_v50  ;;  %v564_v48 = vshrl.u32 %v563_v47, 7  ;;  %v561_v50 = vpop.permute.xlu0 %560 }
 0x1c9   :  { %831 = vtanh.f32 %v272_v52  ;;  %v744_v54 = vpop.f32.mrb[2].mxu1 }
 0x1ca   :  { %v287_v56 = vadd.f32 %v744_v54, %v190_v53  ;;  %v281_v57 = vpop.f32.mrb[3].mxu1  ;;  %v565_v49 = vsub.s32 0, %v564_v48 }
 0x1cb   :  { %v282_v58 = vadd.f32 %v281_v57, %v185_v55 }
 0x1cc   :  { %833 = vtanh.f32 %v287_v56  ;;  %v566_v51 = vrot.slane %v561_v50, %v565_v49 }
 0x1cd   :  { %835 = vtanh.f32 %v282_v58 }
 0x1d2   :  { %v830_v59 = vpop.eup %829 }
 0x1d3   :  { %v832_v60 = vpop.eup %831 }
 0x1d4   :  { %v792_v61 = vpack.c.bf16 %v830_v59, %v832_v60 }
 0x1d6   :  { %v834_v62 = vpop.eup %833  ;;  %793 = vmatprep.subr.bf16.mxu0 %v792_v61 }
 0x1d7   :  { %v836_v63 = vpop.eup %835  ;;  %795 = vmatpush3.bf16.msra.mxu0 %v792_v61 }
 0x1d8   :  { %v796_v0 = vpack.c.bf16 %v834_v62, %v836_v63 }
 0x1da   :  { %797 = vmatprep.subr.bf16.mxu0 %v796_v0 }
 0x1db   :  { %799 = vmatpush3.bf16.msra.mxu0 %v796_v0 }
 0x1dc   :  { %808 = vmatprep.subr.bf16.mxu0 %v878_v26 }
 0x1de   :  { %754 = vmatmul.mubr.msk.f32.vlgmr.msra.gmra.mrb[4].mxu0 %vm192_vm2, %v665_v1 }
 0x1df   :  { %756 = vmatprep.mubr.msk.f32.mxu0 %vm192_vm2, %v666_v2 }
 0x1e2   :  { %757 = vmatmul.mubr.msk.f32.gmra.mrb[6].mxu0 %vm192_vm2, %v667_v3 }
 0x1e3   :  { %781 = vmatprep.mubr.msk.f32.mxu0 %vm879_vm3, %v880_v27 }
 0x2b1   :  { %v755_v7 = vpop.f32.mrb[4].mxu0 }
 0x2b2   :  { %v408_v8 = vadd.f32 %v755_v7, %v312_v5  ;;  %v402_v9 = vpop.f32.mrb[5].mxu0 }
 0x2b3   :  { %v403_v10 = vadd.f32 %v402_v9, %v307_v6 }
 0x2b4   :  { %837 = vtanh.f32 %v408_v8 }
 0x2b5   :  { %839 = vtanh.f32 %v403_v10  ;;  %v758_v12 = vpop.f32.mrb[6].mxu0 }
 0x2b6   :  { %v418_v14 = vadd.f32 %v758_v12, %v322_v11  ;;  %v412_v15 = vpop.f32.mrb[7].mxu0 }
 0x2b7   :  { %v413_v16 = vadd.f32 %v412_v15, %v317_v13 }
 0x2b8   :  { %841 = vtanh.f32 %v418_v14 }
 0x2b9   :  { %843 = vtanh.f32 %v413_v16 }
 0x2be   :  { %v838_v17 = vpop.eup %837 }
 0x2bf   :  { %v840_v18 = vpop.eup %839 }
 0x2c0   :  { %v800_v19 = vpack.c.bf16 %v838_v17, %v840_v18 }
 0x2c2   :  { %v842_v20 = vpop.eup %841  ;;  %801 = vmatprep.subr.bf16.mxu1 %v800_v19 }
 0x2c3   :  { %v844_v21 = vpop.eup %843  ;;  %803 = vmatpush3.bf16.msra.mxu1 %v800_v19 }
 0x2c4   :  { %v804_v22 = vpack.c.bf16 %v842_v20, %v844_v21 }
 0x2c6   :  { %805 = vmatprep.subr.bf16.mxu1 %v804_v22 }
 0x2c7   :  { %807 = vmatpush3.bf16.msra.mxu1 %v804_v22 }
 0x2ca   :  { %768 = vmatmul.mubr.msk.f32.vlgmr.msra.gmra.mrb[4].mxu1 %vm192_vm2, %v677_v23 }
 0x2cb   :  { %770 = vmatprep.mubr.msk.f32.mxu1 %vm192_vm2, %v678_v24 }
 0x2ce   :  { %771 = vmatmul.mubr.msk.f32.gmra.mrb[6].mxu1 %vm192_vm2, %v679_v25 }
 0x39d   :  { %v769_v30 = vpop.f32.mrb[4].mxu1 }
 0x39e   :  { %v539_v31 = vadd.f32 %v769_v30, %v443_v28  ;;  %v533_v32 = vpop.f32.mrb[5].mxu1 }
 0x39f   :  { %v534_v33 = vadd.f32 %v533_v32, %v438_v29 }
 0x3a0   :  { %845 = vtanh.f32 %v539_v31 }
 0x3a1   :  { %847 = vtanh.f32 %v534_v33  ;;  %v772_v35 = vpop.f32.mrb[6].mxu1 }
 0x3a2   :  { %v549_v37 = vadd.f32 %v772_v35, %v453_v34  ;;  %v543_v38 = vpop.f32.mrb[7].mxu1 }
 0x3a3   :  { %v544_v39 = vadd.f32 %v543_v38, %v448_v36 }
 0x3a4   :  { %849 = vtanh.f32 %v549_v37 }
 0x3a5   :  { %851 = vtanh.f32 %v544_v39 }
 0x3aa   :  { %v846_v40 = vpop.eup %845 }
 0x3ab   :  { %v848_v41 = vpop.eup %847 }
 0x3ac   :  { %v809_v42 = vpack.c.bf16 %v846_v40, %v848_v41 }
 0x3ae   :  { %v850_v43 = vpop.eup %849  ;;  %810 = vmatpush3.bf16.msra.mxu0 %v809_v42 }
 0x3af   :  { %v852_v44 = vpop.eup %851  ;;  %811 = vmatprep.subr.bf16.mxu0 %v878_v26 }
 0x3b0   :  { %v812_v45 = vpack.c.bf16 %v850_v43, %v852_v44 }
 0x3b2   :  { %813 = vmatpush3.bf16.msra.mxu0 %v812_v45 }
 0x3b5   :  { %782 = vmatmul.mubr.msk.f32.vlgmr.msra.gmra.mrb[8].mxu0 %vm192_vm2, %v556_v46 }
 0x488   :  { %v636_v52 = vpop.f32.mrb[8].mxu0 }
 0x489   :  { %v637_v53 = vadd.f32 %v636_v52, %v566_v51  ;;  %v783_v54 = vpop.f32.mrb[9].mxu0 }
 0x48b   :  { %640 = vst [vmem:[#allocation3] sm:$0x1] %v637_v53 }
 0x48c   :  { %864 = shalt.err (!%p861_p4)
}
 0x48d   :  { %s865_s4 = scalar_lea.hbm %s1063_s7, 16 }
 0x48e   :  { %p866_p5 = scmp.ne.s32.totalorder %s1063_s7, %s865_s4  ;;  %p869_p6 = scmp.lt.u32.totalorder %s865_s4, %s1063_s7 }
 0x490   :  { %p871_p7 = pnand %p869_p6, %p866_p5 }
 0x492   :  { %874 = shalt.err (!%p871_p7)
}
 0x493   :  { %650 = dma.vmem_to_hbm [thread:$0]  %s648_s14, 16, %s1063_s7, [#allocation4]  }
 0x494   :  { %875 = dma.done.wait [#allocation4], 16  }
 0x495   :  { %876 = vsyncadd [#allocation4], 4294967280 }
 0x496   :  { %654 = vsyncpa [#allocation4], 1 }

</bundles_post_ra>
